<compile_context>
chip_gen: v6e
topology: v6e:2x2x1
jax: 0.10.0
libtpu: 0.0.40
codegen_flags: <defaults>
</compile_context>

<pallas_src>
import jax
import jax.numpy as jnp
from jax.experimental import pallas as pl
from jax.experimental.pallas import tpu as pltpu


def _round_up(x, m):
    return ((x + m - 1) // m) * m


def multi_classifier_kernel(
    img_ref,      # (TB, Di)  bf16 image features
    txt_ref,      # (TB, Dt)  bf16 text features
    wimg_ref,     # (Di, Cp)  bf16 packed: [:, :C]=w_img, [:, C:C+2]=w_wc_img
    bimg_ref,     # (1,  Cp)  f32  packed: [:, :C]=b_img, [:, C:C+2]=b_wc
    wtxt_ref,     # (Dt, Cp)  bf16 packed: [:, :C]=w_txt, [:, C:C+2]=w_wc_txt
    btxt_ref,     # (1,  Cp)  f32  packed: [:, :C]=b_txt
    sel_ref,      # (1,  Cp)  f32  +1 at lane C, -1 at lane C+1, 0 elsewhere
    negmask_ref,  # (1,  Cp)  f32  0 on real-class lanes, -1e30 elsewhere
    out_ref,      # (TB, C)   f32  log-probabilities (real classes only)
):
    # Fused matmuls: class logits + weight-calculator logits in one MXU push
    # per modality (bf16 inputs/weights, f32 accumulation).
    image_full = jnp.dot(img_ref[...], wimg_ref[...],
                         preferred_element_type=jnp.float32) + bimg_ref[...]
    text_full = jnp.dot(txt_ref[...], wtxt_ref[...],
                        preferred_element_type=jnp.float32) + btxt_ref[...]

    # wc logits live at lanes C (image weight) and C+1 (text weight) of the
    # summed logits; 2-class softmax == sigmoid of the logit difference.
    d = jnp.sum((image_full + text_full) * sel_ref[...], axis=-1, keepdims=True)
    w0 = 1.0 / (1.0 + jnp.exp(-d))                  # exp -> EUP slot

    # Blend: w0*image_h + (1-w0)*text_h
    h = text_full + w0 * (image_full - text_full)

    # Mask wc / lane-padding columns, then log-softmax over the real classes.
    hm = h + negmask_ref[...]
    m = jnp.max(hm, axis=-1, keepdims=True)
    shifted = hm - m
    lse = jnp.log(jnp.sum(jnp.exp(shifted), axis=-1, keepdims=True))
    logp = shifted - lse

    # Only the real-class lanes are written back (8x less HBM writeback than
    # the Cp=128 padded layout for C=16).
    C = out_ref.shape[-1]
    out_ref[...] = logp[:, :C].astype(out_ref.dtype)


def pack_params(params, compute_dtype=jnp.bfloat16):
    """One-time parameter packing, hoisted out of the per-call forward path."""
    f32 = jnp.float32
    Di, C = params["w_img"].shape
    Dt = params["w_txt"].shape[0]
    Cp = _round_up(C + 2, 128)   # lane-dense packed class dim (classes + 2 wc cols)

    w_img_p = (jnp.zeros((Di, Cp), f32)
               .at[:, :C].set(params["w_img"].astype(f32))
               .at[:, C:C + 2].set(params["w_wc_img"].astype(f32))
               .astype(compute_dtype))
    w_txt_p = (jnp.zeros((Dt, Cp), f32)
               .at[:, :C].set(params["w_txt"].astype(f32))
               .at[:, C:C + 2].set(params["w_wc_txt"].astype(f32))
               .astype(compute_dtype))
    b_img_p = (jnp.zeros((1, Cp), f32)
               .at[:, :C].set(params["b_img"].astype(f32))
               .at[:, C:C + 2].set(params["b_wc"].astype(f32)))
    b_txt_p = jnp.zeros((1, Cp), f32).at[:, :C].set(params["b_txt"].astype(f32))

    lane = jnp.arange(Cp)
    sel = ((lane == C).astype(f32) - (lane == C + 1).astype(f32)).reshape(1, Cp)
    negmask = jnp.where(lane < C, 0.0, -1e30).astype(f32).reshape(1, Cp)

    return {
        "num_classes": C,
        "w_img_p": w_img_p, "b_img_p": b_img_p,
        "w_txt_p": w_txt_p, "b_txt_p": b_txt_p,
        "sel": sel, "negmask": negmask,
    }


def multi_classifier_forward(image_x, text_x, packed, *, tile_b=2048):
    """Fused MultiClassifier forward as a batch-tiled Pallas kernel."""
    B, Di = image_x.shape
    _, Dt = text_x.shape
    C = packed["num_classes"]
    Cp = packed["w_img_p"].shape[1]
    cdt = packed["w_img_p"].dtype
    f32 = jnp.float32

    # Stream activations in the compute dtype (bf16 halves HBM read traffic);
    # accumulation and the epilogue stay f32 inside the kernel.
    img = image_x if image_x.dtype == cdt else image_x.astype(cdt)
    txt = text_x if text_x.dtype == cdt else text_x.astype(cdt)

    # Ragged batch grid: no wrapper-side padding pass over HBM.  OOB rows of
    # the final block are row-independent garbage whose writes are dropped.
    TB = int(min(tile_b, _round_up(B, 8)))
    grid = (pl.cdiv(B, TB),)

    def batch_spec(d):
        return pl.BlockSpec((TB, d), lambda i: (i, 0))

    def const_spec(shape):
        return pl.BlockSpec(shape, lambda i: (0, 0))

    # Honest VMEM estimate (lane/sublane padded, double buffers) + margin.
    def buf_bytes(rows, cols, dtype):
        return _round_up(rows, 8) * _round_up(cols, 128) * jnp.dtype(dtype).itemsize

    vmem_est = (
        2 * (buf_bytes(TB, Di, cdt) + buf_bytes(TB, Dt, cdt) + buf_bytes(TB, C, f32))
        + 2 * (buf_bytes(Di, Cp, cdt) + buf_bytes(Dt, Cp, cdt))
        + 2 * 4 * buf_bytes(1, Cp, f32))
    vmem_limit = int(min(48 << 20, max(8 << 20, vmem_est + vmem_est // 2 + (2 << 20))))

    return pl.pallas_call(
        multi_classifier_kernel,
        out_shape=jax.ShapeDtypeStruct((B, C), f32),
        grid=grid,
        in_specs=[
            batch_spec(Di),           # image features (streamed per tile)
            batch_spec(Dt),           # text features  (streamed per tile)
            const_spec((Di, Cp)),     # packed image weights (VMEM-resident)
            const_spec((1, Cp)),      # packed image bias (+ wc bias)
            const_spec((Dt, Cp)),     # packed text weights
            const_spec((1, Cp)),      # packed text bias
            const_spec((1, Cp)),      # sel vector
            const_spec((1, Cp)),      # neg-inf lane mask
        ],
        out_specs=batch_spec(C),
        compiler_params=pltpu.CompilerParams(
            # TODO(synk): on v7x, profile both TensorCores; if the batch axis is
            # not sharded across cores, switch to pltpu.CORE_PARALLEL.
            dimension_semantics=("parallel",),
            vmem_limit_bytes=vmem_limit,
        ),
    )(img, txt, packed["w_img_p"], packed["b_img_p"],
      packed["w_txt_p"], packed["b_txt_p"], packed["sel"], packed["negmask"])


def reference_forward(image_x, text_x, params, compute_dtype=jnp.bfloat16):
    """Pure-JAX reference of the PyTorch weight_calculator path, with inputs and
    weights rounded to the kernel's compute dtype and f32 accumulation."""
    f32 = jnp.float32

    def c(a):
        return a.astype(compute_dtype).astype(f32)

    image_h = c(image_x) @ c(params["w_img"]) + params["b_img"].astype(f32)
    text_h = c(text_x) @ c(params["w_txt"]) + params["b_txt"].astype(f32)
    w_logits = (c(image_x) @ c(params["w_wc_img"])
                + c(text_x) @ c(params["w_wc_txt"])
                + params["b_wc"].astype(f32))
    w = jax.nn.softmax(w_logits, axis=-1)
    h = image_h * w[:, 0:1] + text_h * w[:, 1:2]
    return jax.nn.log_softmax(h, axis=1)


def init_params(key, image_dim, text_dim, num_classes):
    ks = jax.random.split(key, 7)
    scale = 0.05
    return {
        "w_img": scale * jax.random.normal(ks[0], (image_dim, num_classes), jnp.float32),
        "b_img": scale * jax.random.normal(ks[1], (1, num_classes), jnp.float32),
        "w_txt": scale * jax.random.normal(ks[2], (text_dim, num_classes), jnp.float32),
        "b_txt": scale * jax.random.normal(ks[3], (1, num_classes), jnp.float32),
        "w_wc_img": scale * jax.random.normal(ks[4], (image_dim, 2), jnp.float32),
        "w_wc_txt": scale * jax.random.normal(ks[5], (text_dim, 2), jnp.float32),
        "b_wc": scale * jax.random.normal(ks[6], (1, 2), jnp.float32),
    }


if __name__ == "__main__":
    B = 8           # batch
    Di = 32         # image feature dim
    Dt = 48         # text feature dim
    C = 16          # num classes

    key = jax.random.PRNGKey(0)
    k_img, k_txt, k_par = jax.random.split(key, 3)
    image_x = jax.random.normal(k_img, (B, Di), jnp.float32)
    text_x = jax.random.normal(k_txt, (B, Dt), jnp.float32)
    params = init_params(k_par, Di, Dt, C)

    packed = pack_params(params)               # one-time packing (hoisted)
    out = multi_classifier_forward(image_x, text_x, packed)
    out = jax.block_until_ready(out)

    ref = reference_forward(image_x, text_x, params)
    assert out.shape == (B, C)
    assert jnp.allclose(out, ref, atol=2e-3, rtol=2e-3), "mismatch vs reference"
    # sanity: rows are valid log-probabilities
    assert jnp.allclose(jnp.sum(jnp.exp(out), axis=1), jnp.ones((B,)), atol=1e-3)

    print("KERNEL_OK")
</pallas_src>

<mosaic_0001>
module attributes {stable_mosaic.version = 11 : i64} {
  func.func @multi_classifier_kernel(%arg0: i32, %arg1: memref<8x32xbf16, #tpu.memory_space<vmem>>, %arg2: memref<8x48xbf16, #tpu.memory_space<vmem>>, %arg3: memref<32x128xbf16, #tpu.memory_space<vmem>>, %arg4: memref<1x128xf32, #tpu.memory_space<vmem>>, %arg5: memref<48x128xbf16, #tpu.memory_space<vmem>>, %arg6: memref<1x128xf32, #tpu.memory_space<vmem>>, %arg7: memref<1x128xf32, #tpu.memory_space<vmem>>, %arg8: memref<1x128xf32, #tpu.memory_space<vmem>>, %arg9: memref<8x16xf32, #tpu.memory_space<vmem>>) attributes {dimension_semantics = [#tpu.dimension_semantics<parallel>], iteration_bounds = array<i64: 1>, scalar_prefetch = 0 : i64, scratch_operands = 0 : i64, tpu.core_type = #tpu.core_type<tc>, window_params = [{transform_indices = @transform_0, window_bounds = array<i64: 8, 32>}, {transform_indices = @transform_1, window_bounds = array<i64: 8, 48>}, {pipeline_mode = #tpu.pipeline_mode<synchronous>, transform_indices = @transform_2, window_bounds = array<i64: 32, 128>}, {pipeline_mode = #tpu.pipeline_mode<synchronous>, transform_indices = @transform_3, window_bounds = array<i64: 1, 128>}, {pipeline_mode = #tpu.pipeline_mode<synchronous>, transform_indices = @transform_4, window_bounds = array<i64: 48, 128>}, {pipeline_mode = #tpu.pipeline_mode<synchronous>, transform_indices = @transform_5, window_bounds = array<i64: 1, 128>}, {pipeline_mode = #tpu.pipeline_mode<synchronous>, transform_indices = @transform_6, window_bounds = array<i64: 1, 128>}, {pipeline_mode = #tpu.pipeline_mode<synchronous>, transform_indices = @transform_7, window_bounds = array<i64: 1, 128>}, {transform_indices = @transform_8, window_bounds = array<i64: 8, 16>}]} {
    %c0 = arith.constant 0 : index
    %c0_0 = arith.constant 0 : index
    %0 = vector.load %arg1[%c0, %c0_0] : memref<8x32xbf16, #tpu.memory_space<vmem>>, vector<8x32xbf16>
    %c0_1 = arith.constant 0 : index
    %c0_2 = arith.constant 0 : index
    %1 = vector.load %arg3[%c0_1, %c0_2] : memref<32x128xbf16, #tpu.memory_space<vmem>>, vector<32x128xbf16>
    %cst = arith.constant dense<0.000000e+00> : vector<8x128xf32>
    %2 = tpu.matmul %0, %1, %cst {dimension_numbers = #tpu.dot_dimension_numbers<[1], [0], [0], [1], [0, 0, 1, 1], [], []>} : vector<8x32xbf16>, vector<32x128xbf16>, vector<8x128xf32> -> vector<8x128xf32>
    %c0_3 = arith.constant 0 : index
    %c0_4 = arith.constant 0 : index
    %3 = vector.load %arg4[%c0_3, %c0_4] : memref<1x128xf32, #tpu.memory_space<vmem>>, vector<1x128xf32>
    %4 = vector.broadcast %3 : vector<1x128xf32> to vector<8x128xf32>
    %5 = arith.addf %2, %4 : vector<8x128xf32>
    %c0_5 = arith.constant 0 : index
    %c0_6 = arith.constant 0 : index
    %6 = vector.load %arg2[%c0_5, %c0_6] : memref<8x48xbf16, #tpu.memory_space<vmem>>, vector<8x48xbf16>
    %c0_7 = arith.constant 0 : index
    %c0_8 = arith.constant 0 : index
    %7 = vector.load %arg5[%c0_7, %c0_8] : memref<48x128xbf16, #tpu.memory_space<vmem>>, vector<48x128xbf16>
    %cst_9 = arith.constant dense<0.000000e+00> : vector<8x128xf32>
    %8 = tpu.matmul %6, %7, %cst_9 {dimension_numbers = #tpu.dot_dimension_numbers<[1], [0], [0], [1], [0, 0, 1, 1], [], []>} : vector<8x48xbf16>, vector<48x128xbf16>, vector<8x128xf32> -> vector<8x128xf32>
    %c0_10 = arith.constant 0 : index
    %c0_11 = arith.constant 0 : index
    %9 = vector.load %arg6[%c0_10, %c0_11] : memref<1x128xf32, #tpu.memory_space<vmem>>, vector<1x128xf32>
    %10 = vector.broadcast %9 : vector<1x128xf32> to vector<8x128xf32>
    %11 = arith.addf %8, %10 : vector<8x128xf32>
    %12 = arith.addf %5, %11 : vector<8x128xf32>
    %c0_12 = arith.constant 0 : index
    %c0_13 = arith.constant 0 : index
    %13 = vector.load %arg7[%c0_12, %c0_13] : memref<1x128xf32, #tpu.memory_space<vmem>>, vector<1x128xf32>
    %14 = vector.broadcast %13 : vector<1x128xf32> to vector<8x128xf32>
    %15 = arith.mulf %12, %14 : vector<8x128xf32>
    %cst_14 = arith.constant dense<0.000000e+00> : vector<8xf32>
    %16 = vector.multi_reduction <add>, %15, %cst_14 [1] : vector<8x128xf32> to vector<8xf32>
    %17 = vector.shape_cast %16 : vector<8xf32> to vector<8x1xf32>
    %cst_15 = arith.constant 0.000000e+00 : f32
    %18 = vector.broadcast %cst_15 : f32 to vector<8x1xf32>
    %19 = arith.subf %18, %17 : vector<8x1xf32>
    %20 = math.exp %19 : vector<8x1xf32>
    %cst_16 = arith.constant 1.000000e+00 : f32
    %21 = vector.broadcast %cst_16 : f32 to vector<8x1xf32>
    %22 = arith.addf %21, %20 : vector<8x1xf32>
    %cst_17 = arith.constant 1.000000e+00 : f32
    %23 = vector.broadcast %cst_17 : f32 to vector<8x1xf32>
    %24 = arith.divf %23, %22 : vector<8x1xf32>
    %25 = arith.subf %5, %11 : vector<8x128xf32>
    %26 = vector.broadcast %24 : vector<8x1xf32> to vector<8x128xf32>
    %27 = arith.mulf %26, %25 : vector<8x128xf32>
    %28 = arith.addf %11, %27 : vector<8x128xf32>
    %c0_18 = arith.constant 0 : index
    %c0_19 = arith.constant 0 : index
    %29 = vector.load %arg8[%c0_18, %c0_19] : memref<1x128xf32, #tpu.memory_space<vmem>>, vector<1x128xf32>
    %30 = vector.broadcast %29 : vector<1x128xf32> to vector<8x128xf32>
    %31 = arith.addf %28, %30 : vector<8x128xf32>
    %cst_20 = arith.constant dense<0xFF800000> : vector<8xf32>
    %32 = vector.multi_reduction <maximumf>, %31, %cst_20 [1] : vector<8x128xf32> to vector<8xf32>
    %33 = vector.shape_cast %32 : vector<8xf32> to vector<8x1xf32>
    %34 = vector.broadcast %33 : vector<8x1xf32> to vector<8x128xf32>
    %35 = arith.subf %31, %34 : vector<8x128xf32>
    %36 = math.exp %35 : vector<8x128xf32>
    %cst_21 = arith.constant dense<0.000000e+00> : vector<8xf32>
    %37 = vector.multi_reduction <add>, %36, %cst_21 [1] : vector<8x128xf32> to vector<8xf32>
    %38 = vector.shape_cast %37 : vector<8xf32> to vector<8x1xf32>
    %39 = math.log %38 : vector<8x1xf32>
    %40 = vector.broadcast %39 : vector<8x1xf32> to vector<8x128xf32>
    %41 = arith.subf %35, %40 : vector<8x128xf32>
    %42 = vector.extract_strided_slice %41 {offsets = [0, 0], sizes = [8, 16], strides = [1, 1]} : vector<8x128xf32> to vector<8x16xf32>
    %c0_22 = arith.constant 0 : index
    %c0_23 = arith.constant 0 : index
    %43 = vector.load %arg9[%c0_22, %c0_23] : memref<8x16xf32, #tpu.memory_space<vmem>>, vector<8x16xf32>
    tpu.vector_store %arg9[%c0_22, %c0_23], %42 {strides = array<i32>} : memref<8x16xf32, #tpu.memory_space<vmem>>, vector<8x16xf32>,
    return
  }
  func.func @transform_0(%arg0: i32) -> (i32, i32) {
    %c0_i32 = arith.constant 0 : i32
    %c0_i32_0 = arith.constant 0 : i32
    return %arg0, %c0_i32 : i32, i32
  }
  func.func @transform_1(%arg0: i32) -> (i32, i32) {
    %c0_i32 = arith.constant 0 : i32
    %c0_i32_0 = arith.constant 0 : i32
    return %arg0, %c0_i32 : i32, i32
  }
  func.func @transform_2(%arg0: i32) -> (i32, i32) {
    %c0_i32 = arith.constant 0 : i32
    %c0_i32_0 = arith.constant 0 : i32
    %c0_i32_1 = arith.constant 0 : i32
    return %c0_i32, %c0_i32_0 : i32, i32
  }
  func.func @transform_3(%arg0: i32) -> (i32, i32) {
    %c0_i32 = arith.constant 0 : i32
    %c0_i32_0 = arith.constant 0 : i32
    %c0_i32_1 = arith.constant 0 : i32
    return %c0_i32, %c0_i32_0 : i32, i32
  }
  func.func @transform_4(%arg0: i32) -> (i32, i32) {
    %c0_i32 = arith.constant 0 : i32
    %c0_i32_0 = arith.constant 0 : i32
    %c0_i32_1 = arith.constant 0 : i32
    return %c0_i32, %c0_i32_0 : i32, i32
  }
  func.func @transform_5(%arg0: i32) -> (i32, i32) {
    %c0_i32 = arith.constant 0 : i32
    %c0_i32_0 = arith.constant 0 : i32
    %c0_i32_1 = arith.constant 0 : i32
    return %c0_i32, %c0_i32_0 : i32, i32
  }
  func.func @transform_6(%arg0: i32) -> (i32, i32) {
    %c0_i32 = arith.constant 0 : i32
    %c0_i32_0 = arith.constant 0 : i32
    %c0_i32_1 = arith.constant 0 : i32
    return %c0_i32, %c0_i32_0 : i32, i32
  }
  func.func @transform_7(%arg0: i32) -> (i32, i32) {
    %c0_i32 = arith.constant 0 : i32
    %c0_i32_0 = arith.constant 0 : i32
    %c0_i32_1 = arith.constant 0 : i32
    return %c0_i32, %c0_i32_0 : i32, i32
  }
  func.func @transform_8(%arg0: i32) -> (i32, i32) {
    %c0_i32 = arith.constant 0 : i32
    %c0_i32_0 = arith.constant 0 : i32
    return %arg0, %c0_i32 : i32, i32
  }
}

</mosaic_0001>

<bundles_post_ra>
// kernel: tpu_custom_call.1
= control target key start
LH: loop header
LB: loop body
LE: loop exit
PB: predicated region body
PF: predicated region fallthrough
CT: control target
= control target key end

     0   :  { %13 = vsyncpa [#allocation3], 0  ;;  %s530_s0 = inlined_call_operand.hbm [shape: bf16[8,32], index: 0, kind: input, shape index: {}]   ;;  %s531_s1 = inlined_call_operand.hbm [shape: bf16[8,48], index: 1, kind: input, shape index: {}]   ;;  %s532_s2 = inlined_call_operand.hbm [shape: bf16[32,128], index: 2, kind: input, shape index: {}]   ;;  %s533_s3 = inlined_call_operand.vmem [shape: f32[1,128], index: 3, kind: input, shape index: {}]   ;;  %s534_s4 = inlined_call_operand.hbm [shape: bf16[48,128], index: 4, kind: input, shape index: {}]   ;;  %s535_s5 = inlined_call_operand.vmem [shape: f32[1,128], index: 5, kind: input, shape index: {}]   ;;  %s536_s6 = inlined_call_operand.vmem [shape: f32[1,128], index: 6, kind: input, shape index: {}]   ;;  %s537_s7 = inlined_call_operand.vmem [shape: f32[1,128], index: 7, kind: input, shape index: {}]   ;;  %s538_s8 = inlined_call_operand.hbm [shape: f32[8,16], index: 8, kind: output, shape index: {}]  }
   0x1   :  { %14 = vsyncpa [#allocation6], 0 }
   0x2   :  { %15 = vsyncpa [#allocation9], 0 }
   0x3   :  { %16 = vsyncpa [#allocation4], 0  ;;  %s449_s27 = smov [#allocation5]   ;;  %s450_s29 = smov [#allocation2]  }
   0x4   :  { %s33_s28 = sshll.u32 %s449_s27, 4  ;;  %s23_s30 = sshll.u32 %s450_s29, 4  ;;  %s34_s28 = int_to_ptr.vmem [resolvable:$true] %s33_s28  ;;  %s24_s30 = int_to_ptr.vmem [resolvable:$true] %s23_s30 }
   0x5   :  { %s349_s9 = scalar_lea.vmem %s34_s28, 64  ;;  %p354_p1 = scmp.lt.s32.totalorder %s34_s28, %s34_s28 }
   0x6   :  { %p350_p0 = scmp.ne.s32.totalorder %s34_s28, %s349_s9  ;;  %p355_p2 = scmp.lt.s32.totalorder %s349_s9, %s349_s9 }
   0x8   :  { %p356_p3 = por %p355_p2, %p354_p1 }
   0xa   :  { %p357_p4 = pnand %p356_p3, %p350_p0 }
   0xc   :  { %360 = shalt.err (!%p357_p4)
}
   0xd   :  { %36 = dma.hbm_to_vmem [thread:$0]  %s531_s1, 64, %s34_s28, [#allocation6]  }
   0xe   :  { %s369_s12 = scalar_lea.vmem %s24_s30, 64  ;;  %p374_p6 = scmp.lt.s32.totalorder %s24_s30, %s24_s30 }
   0xf   :  { %p370_p5 = scmp.ne.s32.totalorder %s24_s30, %s369_s12  ;;  %p375_p7 = scmp.lt.s32.totalorder %s369_s12, %s369_s12 }
  0x11   :  { %p376_p8 = por %p375_p7, %p374_p6 }
  0x13   :  { %p377_p9 = pnand %p376_p8, %p370_p5 }
  0x15   :  { %380 = shalt.err (!%p377_p9)
}
  0x16   :  { %26 = dma.hbm_to_vmem [thread:$0]  %s530_s0, 64, %s24_s30, [#allocation3]  }
  0x17   :  { %s451_s15 = smov [#allocation7]  }
  0x18   :  { %s42_s16 = sshll.u32 %s451_s15, 4  ;;  %s43_s16 = int_to_ptr.vmem [resolvable:$true] %s42_s16 }
  0x19   :  { %s389_s17 = scalar_lea.vmem %s43_s16, 256  ;;  %p394_p11 = scmp.lt.s32.totalorder %s43_s16, %s43_s16 }
  0x1a   :  { %p390_p10 = scmp.ne.s32.totalorder %s43_s16, %s389_s17  ;;  %p395_p12 = scmp.lt.s32.totalorder %s389_s17, %s389_s17 }
  0x1c   :  { %p396_p13 = por %p395_p12, %p394_p11 }
  0x1e   :  { %p397_p0 = pnand %p396_p13, %p390_p10 }
  0x20   :  { %400 = shalt.err (!%p397_p0)
}
  0x21   :  { %s452_s1 = smov 64   ;;  %s453_s18 = smov 4  }
  0x22   :  { %48 = dma.hbm_to_vmem [thread:$0]  %s532_s2, 256, %s43_s16, [#allocation6], %s452_s1, %s452_s1, %s453_s18  }
  0x23   :  { %s454_s21 = smov [#allocation8]  }
  0x24   :  { %s56_s22 = sshll.u32 %s454_s21, 4  ;;  %s57_s22 = int_to_ptr.vmem [resolvable:$true] %s56_s22 }
  0x25   :  { %s409_s0 = scalar_lea.vmem %s57_s22, 384  ;;  %p414_p2 = scmp.lt.s32.totalorder %s57_s22, %s57_s22 }
  0x26   :  { %p410_p1 = scmp.ne.s32.totalorder %s57_s22, %s409_s0  ;;  %p415_p3 = scmp.lt.s32.totalorder %s409_s0, %s409_s0 }
  0x28   :  { %p416_p4 = por %p415_p3, %p414_p2 }
  0x2a   :  { %p417_p5 = pnand %p416_p4, %p410_p1 }
  0x2c   :  { %420 = shalt.err (!%p417_p5)
}
  0x2d   :  { %62 = dma.hbm_to_vmem [thread:$0]  %s534_s4, 384, %s57_s22, [#allocation9], %s452_s1, %s452_s1, %s453_s18  }
  0x2e   :  { %441 = dma.done.wait [#allocation3], 64  }
  0x2f   :  { %442 = vsyncadd [#allocation3], 4294967232 }
  0x30   :  { %443 = dma.done.wait [#allocation6], 320  }
  0x31   :  { %444 = vsyncadd [#allocation6], 4294966976 }
  0x32   :  { %445 = dma.done.wait [#allocation9], 384  }
  0x33   :  { %446 = vsyncadd [#allocation9], 4294966912  ;;  %v455_v0 = vmov 0.0   ;;  %vm456_vm0 = vmmov 0   ;;  %v328_v1 = vld [vmem:[#allocation7 + $0x8] sm:$0xff]   ;;  %v329_v2 = vld [vmem:[#allocation8 + $0x10] sm:$0xff]  }
  0x34   :  { %301 = vmatprep.subr.bf16.mxu0 %v455_v0  ;;  %309 = vmatprep.subr.bf16.mxu1 %v455_v0  ;;  %v330_v3 = vld [vmem:[#allocation7] sm:$0xff]   ;;  %v331_v4 = vld [vmem:[#allocation8 + $0x8] sm:$0xff]   ;;  %vm106_vm1 = vcmask 261120   ;;  %v332_v6 = vld [vmem:[#allocation8] sm:$0xff]   ;;  %vm182_vm2 = vcmask 392192   ;;  %vm264_vm3 = vcmask 130048  }
  0x35   :  { %305 = vmatprep.mubr.msk.bf16.mxu0 %vm456_vm0, %v455_v0  ;;  %315 = vmatprep.mubr.msk.bf16.mxu1 %vm456_vm0, %v455_v0  ;;  %v82_v5 = vld [vmem:[#allocation2] sm:$0xf]  ;;  %v150_v7 = vld [vmem:[#allocation5] sm:$0xf] }
  0x36   :  { %302 = vmatpush3.bf16.msra.mxu0 %v328_v1  ;;  %310 = vmatpush3.bf16.msra.mxu1 %v329_v2  ;;  %v283_v9 = vld [vmem:[%s533_s3] ss:$0 sm:$0xff] }
  0x37   :  { %303 = vmatprep.subr.bf16.mxu0 %v455_v0  ;;  %311 = vmatprep.subr.bf16.mxu1 %v455_v0  ;;  %v287_v11 = vld [vmem:[%s535_s5] ss:$0 sm:$0xff] }
  0x38   :  { %v292_v18 = vld [vmem:[%s536_s6] ss:$0 sm:$0xff]  ;;  %s457_s6 = smov [#allocation10]  }
  0x39   :  { %v293_v31 = vld [vmem:[%s537_s7] ss:$0 sm:$0xff]  ;;  %s272_s29 = sshll.u32 %s457_s6, 4  ;;  %s273_s29 = int_to_ptr.vmem [resolvable:$true] %s272_s29 }
  0x3a   :  { %304 = vmatpush3.bf16.msra.mxu0 %v330_v3  ;;  %312 = vmatpush3.bf16.msra.mxu1 %v331_v4  ;;  %s421_s7 = scalar_lea.vmem %s273_s29, 128  ;;  %p426_p7 = scmp.lt.s32.totalorder %s273_s29, %s273_s29 }
  0x3b   :  { %313 = vmatprep.subr.bf16.mxu1 %v455_v0  ;;  %p422_p6 = scmp.ne.s32.totalorder %s273_s29, %s421_s7  ;;  %p427_p8 = scmp.lt.s32.totalorder %s421_s7, %s421_s7 }
  0x3d   :  { %306 = vmatmul.mubr.msk.bf16.vlgmr.msra.gmra.mxu0 %vm106_vm1, %v82_v5  ;;  %p428_p9 = por %p427_p8, %p426_p7 }
  0x3e   :  { %314 = vmatpush3.bf16.msra.mxu1 %v332_v6 }
  0x3f   :  { %p429_p10 = pnand %p428_p9, %p422_p6 }
  0x41   :  { %316 = vmatmul.mubr.msk.bf16.vlgmr.msra.gmra.mxu1 %vm182_vm2, %v150_v7 }
  0xfd   :  { %v144_v8 = vpop.f32.mrf.mxu0 }
  0xfe   :  { %v145_v12 = vadd.f32 %v283_v9, %v144_v8 }
  0xff   :  { %v307_v10 = vpop.f32.mrf.mxu0 }
 0x101   :  { %v147_v13 = vpop.f32.mrf.mxu0  ;;  %v220_v14 = vpop.f32.mrf.mxu1 }
 0x102   :  { %v221_v15 = vadd.f32 %v287_v11, %v220_v14 }
 0x103   :  { %v308_v16 = vpop.f32.mrf.mxu0  ;;  %v317_v17 = vpop.f32.mrf.mxu1 }
 0x104   :  { %v226_v19 = vadd.f32 %v221_v15, %v145_v12  ;;  %v243_v28 = vsub.f32 %v145_v12, %v221_v15 }
 0x105   :  { %v223_v20 = vpop.f32.mrf.mxu1 }
 0x106   :  { %v234_v21 = vmul.f32 %v292_v18, %v226_v19 }
 0x107   :  { %v318_v22 = vpop.f32.mrf.mxu1 }
 0x108   :  { %235 = vadd.xlane.f32.xlu0 %v234_v21 }
 0x191   :  { %v236_v23 = vpop.xlane.xlu0 %235 }
 0x192   :  { %v237_v24 = vsub.f32 0.0, %v236_v23 }
 0x194   :  { %v238_v25 = vmul.f32 1.442695, %v237_v24 }
 0x196   :  { %333 = vpow2.f32 %v238_v25 }
 0x1a3   :  { %v334_v26 = vpop.eup %333 }
 0x1a4   :  { %v240_v27 = vadd.f32 1.0, %v334_v26 }
 0x1a6   :  { %335 = vrcp.f32 %v240_v27 }
 0x1b3   :  { %v336_v29 = vpop.eup %335 }
 0x1b4   :  { %v244_v30 = vmul.f32 %v336_v29, %v243_v28 }
 0x1b6   :  { %v245_v32 = vadd.f32 %v244_v30, %v221_v15 }
 0x1b8   :  { %v253_v33 = vadd.f32 %v293_v31, %v245_v32 }
 0x1ba   :  { %254 = vmax.xlane.f32.xlu0 %v253_v33 }
 0x243   :  { %v255_v34 = vpop.xlane.xlu0 %254 }
 0x244   :  { %v256_v35 = vsub.f32 %v253_v33, %v255_v34 }
 0x246   :  { %v257_v36 = vmul.f32 1.442695, %v256_v35 }
 0x248   :  { %337 = vpow2.f32 %v257_v36 }
 0x255   :  { %v338_v37 = vpop.eup %337 }
 0x256   :  { %259 = vadd.xlane.f32.xlu1 %v338_v37 }
 0x2df   :  { %v260_v38 = vpop.xlane.xlu1 %259 }
 0x2e0   :  { %339 = vlog2.f32 %v260_v38 }
 0x2ed   :  { %v340_v39 = vpop.eup %339 }
 0x2ee   :  { %v262_v40 = vmul.f32 0.6931472, %v340_v39 }
 0x2f0   :  { %v263_v41 = vsub.f32 %v256_v35, %v262_v40 }
 0x2f2   :  { %265 = vst.msk [vmem:[#allocation10] sm:$0xff] %vm264_vm3, %v263_v41 }
 0x2f3   :  { %432 = shalt.err (!%p429_p10)
}
 0x2f4   :  { %275 = dma.vmem_to_hbm [thread:$0]  %s273_s29, 128, %s538_s8, [#allocation4]  }
 0x2f5   :  { %447 = dma.done.wait [#allocation4], 128  }
 0x2f6   :  { %448 = vsyncadd [#allocation4], 4294967168 }
 0x2f7   :  { %279 = vsyncpa [#allocation3], 1 }
 0x2f8   :  { %280 = vsyncpa [#allocation6], 1 }
 0x2f9   :  { %281 = vsyncpa [#allocation9], 1 }
 0x2fa   :  { %282 = vsyncpa [#allocation4], 1 }

</bundles_post_ra>
